<compile_context>
chip_gen: v7x
topology: tpu7x:2x2x1
jax: 0.10.0
libtpu: 0.0.40
codegen_flags: <defaults>
</compile_context>

<pallas_src>
import jax
import jax.numpy as jnp
from jax.experimental import pallas as pl
from jax.experimental.pallas import tpu as pltpu

EPS = 1e-5


# ----------------------------------------------------------------------------
# small helpers (wrapper-side glue)
# ----------------------------------------------------------------------------
def _round_up(x, m):
    return ((x + m - 1) // m) * m


def _pad2d(a, rows, cols):
    return jnp.pad(a, ((0, rows - a.shape[0]), (0, cols - a.shape[1])))


def _pad_last(a, target):
    pad = target - a.shape[-1]
    if pad == 0:
        return a
    return jnp.pad(a, [(0, 0)] * (a.ndim - 1) + [(0, pad)])


def _pad_chan(v, cpad):
    return jnp.pad(v.astype(jnp.float32), (0, cpad - v.shape[0])).reshape(1, cpad)


def _tpu_defaults():
    """Generation-aware channel tile (MXU N width) and VMEM budget."""
    tc_hw = 128
    vmem = 48 * 1024 * 1024                      # safe everywhere, incl. v7x's 64 MiB VMEM
    try:
        kind = jax.devices()[0].device_kind.lower()
        if "v6" in kind or "v7" in kind or "7x" in kind:
            tc_hw = 256                          # 2x256^2 MXU on v6e / v7x
        if "v7" in kind or "7x" in kind:
            vmem = 48 * 1024 * 1024              # only 64 MiB physical VMEM per TensorCore
        elif "v5" in kind or "v6" in kind:
            vmem = 96 * 1024 * 1024              # 128 MiB physical VMEM
    except Exception:
        pass
    return tc_hw, vmem


# ----------------------------------------------------------------------------
# Kernel 1: tiled matmul (bf16 MXU, f32 acc) + cross-tile per-channel sum / sumsq
# grid = (C_tiles, M_tiles); M innermost & "arbitrary" so the (1, tc) stat blocks
# stay resident and accumulate training-BN statistics across all M tiles.
# Zero-padded M rows contribute 0 to both sums; the wrapper divides by the real M.
# ----------------------------------------------------------------------------
def _conv_stats_kernel(p_ref, w_ref, z_ref, s_ref, q_ref):
    y = jnp.dot(p_ref[...], w_ref[...], preferred_element_type=jnp.float32)
    z_ref[...] = y.astype(z_ref.dtype)

    @pl.when(pl.program_id(1) == 0)
    def _():
        s_ref[...] = jnp.zeros_like(s_ref)
        q_ref[...] = jnp.zeros_like(q_ref)

    s_ref[...] += jnp.sum(y, axis=0, keepdims=True)
    q_ref[...] += jnp.sum(y * y, axis=0, keepdims=True)


def conv_stats(p, w, tm, tc, vmem_limit):
    """p: (Mp, Kp) bf16 (zero-padded rows); w: (Kp, cpad) bf16.
    Returns z = p @ w (bf16) plus per-channel sum and sum-of-squares (f32)."""
    Mp, Kp = p.shape
    cpad = w.shape[1]
    n_m = Mp // tm
    n_c = cpad // tc
    p_kwargs = {}
    if n_m >= 3:
        # deeper buffering on the streamed patch slab once the M axis really pipelines
        p_kwargs["pipeline_mode"] = pl.Buffered(3)
    return pl.pallas_call(
        _conv_stats_kernel,
        grid=(n_c, n_m),
        out_shape=(jax.ShapeDtypeStruct((Mp, cpad), jnp.bfloat16),
                   jax.ShapeDtypeStruct((1, cpad), jnp.float32),
                   jax.ShapeDtypeStruct((1, cpad), jnp.float32)),
        in_specs=[pl.BlockSpec((tm, Kp), lambda j, m: (m, 0), **p_kwargs),
                  pl.BlockSpec((Kp, tc), lambda j, m: (0, j))],
        out_specs=(pl.BlockSpec((tm, tc), lambda j, m: (m, j)),
                   pl.BlockSpec((1, tc), lambda j, m: (0, j)),
                   pl.BlockSpec((1, tc), lambda j, m: (0, j))),
        compiler_params=pltpu.CompilerParams(
            dimension_semantics=("parallel", "arbitrary"),
            vmem_limit_bytes=vmem_limit),
    )(p, w)


def _folded_bn_affine(s, q, count, gamma, beta):
    """Finish training-mode BN from accumulated sums and fold it to out = y*a + c."""
    cpad = s.shape[1]
    mean = s / count
    var = q / count - mean * mean                 # biased variance (training BatchNorm)
    g = _pad_chan(gamma, cpad)
    b = _pad_chan(beta, cpad)
    a = g * jax.lax.rsqrt(var + EPS)
    c = b - mean * a
    return a, c                                    # (1, cpad) f32 each


# ----------------------------------------------------------------------------
# Kernel 1b: elementwise BN affine + ReLU (second pass of the two-pass BN)
# ----------------------------------------------------------------------------
def _bn_relu_kernel(z_ref, a_ref, c_ref, o_ref):
    y = z_ref[...].astype(jnp.float32) * a_ref[...] + c_ref[...]
    o_ref[...] = jnp.maximum(y, 0.0).astype(o_ref.dtype)


def bn_relu(z, a, c, tm, vmem_limit):
    Mp, cpad = z.shape
    return pl.pallas_call(
        _bn_relu_kernel,
        grid=(Mp // tm,),
        out_shape=jax.ShapeDtypeStruct((Mp, cpad), jnp.bfloat16),
        in_specs=[pl.BlockSpec((tm, cpad), lambda m: (m, 0)),
                  pl.BlockSpec((1, cpad), lambda m: (0, 0)),
                  pl.BlockSpec((1, cpad), lambda m: (0, 0))],
        out_specs=pl.BlockSpec((tm, cpad), lambda m: (m, 0)),
        compiler_params=pltpu.CompilerParams(
            dimension_semantics=("parallel",),
            vmem_limit_bytes=vmem_limit),
    )(z, a, c)


# ----------------------------------------------------------------------------
# Kernel 2: conv2 (3x3, s=1) by in-kernel tap accumulation + AdaIN + folded shortcut
# affine + residual + ReLU, fully fused.  grid = (C_tiles, content/style pairs),
# pairs innermost so the per-tap weight block stays resident.  Both halves of the
# output are written into one (2, half, HW, C) buffer (no concatenate afterwards).
# ----------------------------------------------------------------------------
def _make_conv2_adain_kernel(Ho, Wo, tc, eps=EPS):
    hw = Ho * Wo
    inv_n = 1.0 / hw
    inv_nm1 = 1.0 / max(hw - 1, 1)       # PyTorch .var() is unbiased; guard hw == 1

    def kernel(xc_ref, xs_ref, w_ref, scc_ref, scs_ref, a_ref, c_ref, o_ref, zbuf):
        # xc_ref / xs_ref: (Hp, Wp, Cin) bf16 spatially zero-padded feature of one sample
        # w_ref: (9, Cin, tc) bf16 per-tap weights      zbuf: (hw, tc) f32 scratch
        def conv3x3_into_zbuf(x_ref):
            def row_body(y, carry):
                acc = jnp.zeros((Wo, tc), jnp.float32)
                for ky in range(3):
                    for kx in range(3):
                        patch = x_ref[y + ky, pl.ds(kx, Wo), :]          # (Wo, Cin)
                        acc = acc + jnp.dot(patch, w_ref[ky * 3 + kx],
                                            preferred_element_type=jnp.float32)
                zbuf[pl.ds(y * Wo, Wo), :] = acc
                return carry
            jax.lax.fori_loop(0, Ho, row_body, 0, unroll=Ho <= 16)

        a_s = a_ref[...]                 # folded shortcut-BN affine (identity: a=1, c=0)
        c_s = c_ref[...]

        # ---- style half: conv2 + shortcut + ReLU; keep its AdaIN stats ----
        conv3x3_into_zbuf(xs_ref)
        zs = zbuf[...]
        ms = jnp.sum(zs, axis=0, keepdims=True) * inv_n
        d = zs - ms
        vs = jnp.sum(d * d, axis=0, keepdims=True) * inv_nm1
        sc_s = scs_ref[...].astype(jnp.float32) * a_s + c_s
        o_ref[1] = jnp.maximum(zs + sc_s, 0.0).astype(o_ref.dtype)

        # ---- content half: conv2 + AdaIN (folded to 1 mul + 1 add) + shortcut + ReLU ----
        conv3x3_into_zbuf(xc_ref)
        zc = zbuf[...]
        mc = jnp.sum(zc, axis=0, keepdims=True) * inv_n
        d = zc - mc
        vc = jnp.sum(d * d, axis=0, keepdims=True) * inv_nm1
        aa = jnp.sqrt(vs + eps) * jax.lax.rsqrt(vc + eps)
        cc = ms - mc * aa
        sc_c = scc_ref[...].astype(jnp.float32) * a_s + c_s
        o_ref[0] = jnp.maximum(zc * aa + cc + sc_c, 0.0).astype(o_ref.dtype)

    return kernel


def conv2_adain_residual(out1_pad, w2_taps, sc, a_sc, c_sc, half, Ho, Wo, tc, vmem_limit):
    _, Hp, Wp, cin = out1_pad.shape
    cpad = w2_taps.shape[2]
    hw = Ho * Wo
    return pl.pallas_call(
        _make_conv2_adain_kernel(Ho, Wo, tc),
        grid=(cpad // tc, half),
        out_shape=jax.ShapeDtypeStruct((2, half, hw, cpad), jnp.float32),
        in_specs=[
            pl.BlockSpec((None, Hp, Wp, cin), lambda j, n: (n, 0, 0, 0)),          # content feat
            pl.BlockSpec((None, Hp, Wp, cin), lambda j, n: (n + half, 0, 0, 0)),   # style feat
            pl.BlockSpec((9, cin, tc), lambda j, n: (0, 0, j)),                    # conv2 taps
            pl.BlockSpec((None, hw, tc), lambda j, n: (n, 0, j)),                  # content sc
            pl.BlockSpec((None, hw, tc), lambda j, n: (n + half, 0, j)),           # style sc
            pl.BlockSpec((1, tc), lambda j, n: (0, j)),                            # sc affine a
            pl.BlockSpec((1, tc), lambda j, n: (0, j)),                            # sc affine c
        ],
        out_specs=pl.BlockSpec((2, None, hw, tc), lambda j, n: (0, n, 0, j)),
        scratch_shapes=[pltpu.VMEM((hw, tc), jnp.float32)],
        compiler_params=pltpu.CompilerParams(
            dimension_semantics=("parallel", "parallel"),
            vmem_limit_bytes=vmem_limit),
    )(out1_pad, out1_pad, w2_taps, sc, sc, a_sc, c_sc)


# ----------------------------------------------------------------------------
# Glue: im2col for conv1 (stride-aware), weight reshapes, block wiring
# ----------------------------------------------------------------------------
def _im2col_3x3(x_nhwc, stride):
    N, H, W, C = x_nhwc.shape
    xp = jnp.pad(x_nhwc, ((0, 0), (1, 1), (1, 1), (0, 0)))
    Ho = (H + 2 - 3) // stride + 1
    Wo = (W + 2 - 3) // stride + 1
    cols = []
    for ky in range(3):
        for kx in range(3):
            cols.append(xp[:, ky:ky + stride * (Ho - 1) + 1:stride,
                              kx:kx + stride * (Wo - 1) + 1:stride, :])
    p = jnp.stack(cols, axis=3)                       # (N, Ho, Wo, 9, C)
    return p.reshape(N * Ho * Wo, 9 * C), Ho, Wo


def post_block_forward(x_nchw, params, in_planes, planes, stride):
    N, Cin, H, W = x_nchw.shape
    assert Cin == in_planes and N % 2 == 0            # AdaIN pairs content/style halves
    tc_hw, vmem_limit = _tpu_defaults()
    x = jnp.transpose(x_nchw, (0, 2, 3, 1)).astype(jnp.float32)      # NHWC

    # lane-dense channel padding only when it is worth the HBM bytes
    if planes <= 128:
        cpad = tc = planes
    else:
        tc = tc_hw
        cpad = _round_up(planes, tc)

    # ---- conv1 (3x3, stride) + training-mode BN (two-pass) + ReLU ----------
    # TODO(synk): tap-accumulate conv1 in-kernel too (needs stride-aware slicing); im2col kept.
    p1, Ho, Wo = _im2col_3x3(x.astype(jnp.bfloat16), stride)
    M = N * Ho * Wo
    hw = Ho * Wo
    half = N // 2
    tm = 512 if M >= 512 else _round_up(M, 8)
    Mp = _round_up(M, tm)
    k1p = _round_up(p1.shape[1], 16)                  # clean bf16 sublane packing
    p1 = _pad2d(p1, Mp, k1p)
    w1 = jnp.transpose(params["w1"], (2, 3, 1, 0)).reshape(9 * in_planes, planes)
    w1 = _pad2d(w1, k1p, cpad).astype(jnp.bfloat16)

    z1, s1, q1 = conv_stats(p1, w1, tm, tc, vmem_limit)
    a1, c1 = _folded_bn_affine(s1, q1, M, params["g1"], params["b1"])
    out1 = bn_relu(z1, a1, c1, tm, vmem_limit)                        # (Mp, cpad) bf16
    out1 = out1[:M].reshape(N, Ho, Wo, cpad)
    out1_pad = jnp.pad(out1, ((0, 0), (1, 1), (1, 1), (0, 0)))        # zero halo for conv2 taps
    # TODO(synk): fold the BN affine+ReLU into the conv2 prologue (with halo masks) to skip this
    #             out1 HBM round trip entirely.

    # ---- shortcut: identity (f32 pass-through) or 1x1 conv(stride); its BN affine is
    #      folded into the conv2 epilogue, so only the raw bf16 conv output is stored ----
    if stride != 1 or in_planes != planes:
        xs = x[:, ::stride, ::stride, :].reshape(M, in_planes).astype(jnp.bfloat16)
        ksp = _round_up(in_planes, 16)
        xs = _pad2d(xs, Mp, ksp)
        ws = jnp.transpose(params["ws"], (2, 3, 1, 0)).reshape(in_planes, planes)
        ws = _pad2d(ws, ksp, cpad).astype(jnp.bfloat16)
        zsc, ssc, qsc = conv_stats(xs, ws, tm, tc, vmem_limit)
        a_sc, c_sc = _folded_bn_affine(ssc, qsc, M, params["gs"], params["bs"])
        sc = zsc[:M].reshape(N, hw, cpad)             # pre-BN, bf16
    else:
        sc = _pad_last(x.reshape(N, hw, in_planes), cpad)             # exact, f32
        a_sc = jnp.ones((1, cpad), jnp.float32)
        c_sc = jnp.zeros((1, cpad), jnp.float32)

    # ---- conv2 (3x3, s=1) + AdaIN + residual + ReLU, one fused kernel ------
    w2 = jnp.transpose(params["w2"], (2, 3, 1, 0)).reshape(9, planes, planes)
    w2 = jnp.pad(w2, ((0, 0), (0, cpad - planes), (0, cpad - planes))).astype(jnp.bfloat16)

    out = conv2_adain_residual(out1_pad, w2, sc, a_sc, c_sc, half, Ho, Wo, tc, vmem_limit)
    out = out.reshape(N, hw, cpad)[..., :planes].reshape(N, Ho, Wo, planes)
    return jnp.transpose(out, (0, 3, 1, 2))                           # -> NCHW


# ----------------------------------------------------------------------------
# Deterministic parameter init (shapes from the nn.Module __init__)
# ----------------------------------------------------------------------------
def init_params(key, in_planes, planes, stride):
    ks = jax.random.split(key, 7)
    p = {
        "w1": 0.1 * jax.random.normal(ks[0], (planes, in_planes, 3, 3), jnp.float32),
        "g1": 1.0 + 0.1 * jax.random.normal(ks[1], (planes,), jnp.float32),
        "b1": 0.1 * jax.random.normal(ks[2], (planes,), jnp.float32),
        "w2": 0.1 * jax.random.normal(ks[3], (planes, planes, 3, 3), jnp.float32),
    }
    if stride != 1 or in_planes != planes:
        p["ws"] = 0.1 * jax.random.normal(ks[4], (planes, in_planes, 1, 1), jnp.float32)
        p["gs"] = 1.0 + 0.05 * jax.random.normal(ks[5], (planes,), jnp.float32)
        p["bs"] = 0.05 * jax.random.normal(ks[6], (planes,), jnp.float32)
    return p


# ----------------------------------------------------------------------------
# Pure-JAX f32 reference (mirrors the PyTorch forward, training-mode BN + AdaIN)
# ----------------------------------------------------------------------------
def _conv_ref(x, w, stride, pad):
    return jax.lax.conv_general_dilated(
        x, w, (stride, stride), [(pad, pad), (pad, pad)],
        dimension_numbers=("NCHW", "OIHW", "NCHW"),
        precision=jax.lax.Precision.HIGHEST)


def _bn_ref(y, g, b):
    mean = y.mean(axis=(0, 2, 3), keepdims=True)
    var = y.var(axis=(0, 2, 3), keepdims=True)        # biased, like training BN
    return (y - mean) / jnp.sqrt(var + EPS) * g.reshape(1, -1, 1, 1) + b.reshape(1, -1, 1, 1)


def _adain_ref(feat):
    n, c = feat.shape[:2]
    half = n // 2
    content, style = feat[:half], feat[half:]

    def mean_std(f):
        v = f.reshape(f.shape[0], c, -1)
        std = jnp.sqrt(v.var(axis=2, ddof=1) + EPS).reshape(f.shape[0], c, 1, 1)
        mean = v.mean(axis=2).reshape(f.shape[0], c, 1, 1)
        return mean, std

    sm, ss = mean_std(style)
    cm, cs = mean_std(content)
    adaptive = (content - cm) / cs * ss + sm
    return jnp.concatenate([adaptive, style], axis=0)


def ref_forward(x, params, in_planes, planes, stride):
    y = jnp.maximum(_bn_ref(_conv_ref(x, params["w1"], stride, 1),
                            params["g1"], params["b1"]), 0.0)
    z = _adain_ref(_conv_ref(y, params["w2"], 1, 1))
    if stride != 1 or in_planes != planes:
        s = _bn_ref(_conv_ref(x, params["ws"], stride, 0), params["gs"], params["bs"])
    else:
        s = x
    return jnp.maximum(z + s, 0.0)


# ----------------------------------------------------------------------------
if __name__ == "__main__":
    key = jax.random.PRNGKey(0)
    k_x1, k_x2, k_p1, k_p2 = jax.random.split(key, 4)

    # bf16 MXU operands and bf16 HBM intermediates drift ~1e-2 from the f32 HIGHEST
    # reference; tolerance relaxed accordingly (noted explicitly).
    TOL = dict(atol=5e-2, rtol=5e-2)

    # Case 1: projection shortcut (stride=2, 4 -> 8 channels) -- primary case.
    N, in_planes, planes, stride, H, W = 2, 4, 8, 2, 16, 16
    x1 = jax.random.normal(k_x1, (N, in_planes, H, W), jnp.float32)
    params1 = init_params(k_p1, in_planes, planes, stride)
    y1 = jax.block_until_ready(post_block_forward(x1, params1, in_planes, planes, stride))
    r1 = ref_forward(x1, params1, in_planes, planes, stride)
    assert y1.shape == (N, planes, H // stride, W // stride)
    assert jnp.allclose(y1, r1, **TOL), float(jnp.max(jnp.abs(y1 - r1)))

    # Case 2: identity shortcut (stride=1, same channels), 2 content/style pairs;
    # exercises the cross-M-tile stat accumulation (2 M steps) and multi-pair conv2 grid.
    N2, planes2 = 4, 8
    x2 = jax.random.normal(k_x2, (N2, planes2, H, W), jnp.float32)
    params2 = init_params(k_p2, planes2, planes2, 1)
    y2 = jax.block_until_ready(post_block_forward(x2, params2, planes2, planes2, 1))
    r2 = ref_forward(x2, params2, planes2, planes2, 1)
    assert y2.shape == (N2, planes2, H, W)
    assert jnp.allclose(y2, r2, **TOL), float(jnp.max(jnp.abs(y2 - r2)))

    print("KERNEL_OK")
</pallas_src>

<mosaic_0001>
module attributes {stable_mosaic.version = 11 : i64} {
  func.func @_conv_stats_kernel(%arg0: i32, %arg1: i32, %arg2: memref<128x48xbf16, #tpu.memory_space<vmem>>, %arg3: memref<48x8xbf16, #tpu.memory_space<vmem>>, %arg4: memref<128x8xbf16, #tpu.memory_space<vmem>>, %arg5: memref<1x8xf32, #tpu.memory_space<vmem>>, %arg6: memref<1x8xf32, #tpu.memory_space<vmem>>) attributes {dimension_semantics = [#tpu.dimension_semantics<parallel>, #tpu.dimension_semantics<arbitrary>], iteration_bounds = array<i64: 1, 1>, scalar_prefetch = 0 : i64, scratch_operands = 0 : i64, tpu.core_type = #tpu.core_type<tc>, window_params = [{transform_indices = @transform_0, window_bounds = array<i64: 128, 48>}, {transform_indices = @transform_1, window_bounds = array<i64: 48, 8>}, {transform_indices = @transform_2, window_bounds = array<i64: 128, 8>}, {transform_indices = @transform_3, window_bounds = array<i64: 1, 8>}, {transform_indices = @transform_4, window_bounds = array<i64: 1, 8>}]} {
    %c0 = arith.constant 0 : index
    %c0_0 = arith.constant 0 : index
    %0 = vector.load %arg2[%c0, %c0_0] : memref<128x48xbf16, #tpu.memory_space<vmem>>, vector<128x48xbf16>
    %c0_1 = arith.constant 0 : index
    %c0_2 = arith.constant 0 : index
    %1 = vector.load %arg3[%c0_1, %c0_2] : memref<48x8xbf16, #tpu.memory_space<vmem>>, vector<48x8xbf16>
    %cst = arith.constant dense<0.000000e+00> : vector<128x8xf32>
    %2 = tpu.matmul %0, %1, %cst {dimension_numbers = #tpu.dot_dimension_numbers<[1], [0], [0], [1], [0, 0, 1, 1], [], []>} : vector<128x48xbf16>, vector<48x8xbf16>, vector<128x8xf32> -> vector<128x8xf32>
    %3 = arith.truncf %2 : vector<128x8xf32> to vector<128x8xbf16>
    %c0_3 = arith.constant 0 : index
    %c0_4 = arith.constant 0 : index
    %4 = vector.load %arg4[%c0_3, %c0_4] : memref<128x8xbf16, #tpu.memory_space<vmem>>, vector<128x8xbf16>
    tpu.vector_store %arg4[%c0_3, %c0_4], %3 {strides = array<i32>} : memref<128x8xbf16, #tpu.memory_space<vmem>>, vector<128x8xbf16>,
    %c0_i32 = arith.constant 0 : i32
    %5 = arith.cmpi eq, %arg1, %c0_i32 : i32
    %6 = arith.extui %5 : i1 to i32
    %c0_i32_5 = arith.constant 0 : i32
    %7 = arith.cmpi ne, %6, %c0_i32_5 : i32
    scf.if %7 {
      %cst_16 = arith.constant 0.000000e+00 : f32
      %19 = vector.broadcast %cst_16 : f32 to vector<1x8xf32>
      %c0_17 = arith.constant 0 : index
      %c0_18 = arith.constant 0 : index
      %20 = vector.load %arg5[%c0_17, %c0_18] : memref<1x8xf32, #tpu.memory_space<vmem>>, vector<1x8xf32>
      tpu.vector_store %arg5[%c0_17, %c0_18], %19 {strides = array<i32>} : memref<1x8xf32, #tpu.memory_space<vmem>>, vector<1x8xf32>,
      %cst_19 = arith.constant 0.000000e+00 : f32
      %21 = vector.broadcast %cst_19 : f32 to vector<1x8xf32>
      %c0_20 = arith.constant 0 : index
      %c0_21 = arith.constant 0 : index
      %22 = vector.load %arg6[%c0_20, %c0_21] : memref<1x8xf32, #tpu.memory_space<vmem>>, vector<1x8xf32>
      tpu.vector_store %arg6[%c0_20, %c0_21], %21 {strides = array<i32>} : memref<1x8xf32, #tpu.memory_space<vmem>>, vector<1x8xf32>,
    } else {
    }
    %c0_6 = arith.constant 0 : index
    %c0_7 = arith.constant 0 : index
    %8 = vector.load %arg5[%c0_6, %c0_7] : memref<1x8xf32, #tpu.memory_space<vmem>>, vector<1x8xf32>
    %cst_8 = arith.constant dense<0.000000e+00> : vector<8xf32>
    %9 = vector.multi_reduction <add>, %2, %cst_8 [0] : vector<128x8xf32> to vector<8xf32>
    %10 = vector.shape_cast %9 : vector<8xf32> to vector<1x8xf32>
    %11 = arith.addf %8, %10 : vector<1x8xf32>
    %c0_9 = arith.constant 0 : index
    %c0_10 = arith.constant 0 : index
    %12 = vector.load %arg5[%c0_9, %c0_10] : memref<1x8xf32, #tpu.memory_space<vmem>>, vector<1x8xf32>
    tpu.vector_store %arg5[%c0_9, %c0_10], %11 {strides = array<i32>} : memref<1x8xf32, #tpu.memory_space<vmem>>, vector<1x8xf32>,
    %c0_11 = arith.constant 0 : index
    %c0_12 = arith.constant 0 : index
    %13 = vector.load %arg6[%c0_11, %c0_12] : memref<1x8xf32, #tpu.memory_space<vmem>>, vector<1x8xf32>
    %14 = arith.mulf %2, %2 : vector<128x8xf32>
    %cst_13 = arith.constant dense<0.000000e+00> : vector<8xf32>
    %15 = vector.multi_reduction <add>, %14, %cst_13 [0] : vector<128x8xf32> to vector<8xf32>
    %16 = vector.shape_cast %15 : vector<8xf32> to vector<1x8xf32>
    %17 = arith.addf %13, %16 : vector<1x8xf32>
    %c0_14 = arith.constant 0 : index
    %c0_15 = arith.constant 0 : index
    %18 = vector.load %arg6[%c0_14, %c0_15] : memref<1x8xf32, #tpu.memory_space<vmem>>, vector<1x8xf32>
    tpu.vector_store %arg6[%c0_14, %c0_15], %17 {strides = array<i32>} : memref<1x8xf32, #tpu.memory_space<vmem>>, vector<1x8xf32>,
    return
  }
  func.func @transform_0(%arg0: i32, %arg1: i32) -> (i32, i32) {
    %c0_i32 = arith.constant 0 : i32
    %c0_i32_0 = arith.constant 0 : i32
    return %arg1, %c0_i32 : i32, i32
  }
  func.func @transform_1(%arg0: i32, %arg1: i32) -> (i32, i32) {
    %c0_i32 = arith.constant 0 : i32
    %c0_i32_0 = arith.constant 0 : i32
    return %c0_i32, %arg0 : i32, i32
  }
  func.func @transform_2(%arg0: i32, %arg1: i32) -> (i32, i32) {
    %c0_i32 = arith.constant 0 : i32
    return %arg1, %arg0 : i32, i32
  }
  func.func @transform_3(%arg0: i32, %arg1: i32) -> (i32, i32) {
    %c0_i32 = arith.constant 0 : i32
    %c0_i32_0 = arith.constant 0 : i32
    return %c0_i32, %arg0 : i32, i32
  }
  func.func @transform_4(%arg0: i32, %arg1: i32) -> (i32, i32) {
    %c0_i32 = arith.constant 0 : i32
    %c0_i32_0 = arith.constant 0 : i32
    return %c0_i32, %arg0 : i32, i32
  }
}

</mosaic_0001>

<bundles_post_ra>
// kernel: tpu_custom_call.1
= control target key start
LH: loop header
LB: loop body
LE: loop exit
PB: predicated region body
PF: predicated region fallthrough
CT: control target
= control target key end

     0   :  { %10 = vsyncpa [#allocation3], 0  ;;  %vm97_vm0 = vcmask 392192   ;;  %s832_s0 = inlined_call_operand.vmem [shape: bf16[128,48], index: 0, kind: input, shape index: {}]   ;;  %s833_s1 = inlined_call_operand.vmem [shape: bf16[48,8], index: 1, kind: input, shape index: {}]   ;;  %s834_s2 = inlined_call_operand.vmem [shape: bf16[128,8], index: 2, kind: output, shape index: {0}]   ;;  %s835_s3 = inlined_call_operand.hbm [shape: f32[1,8], index: 3, kind: output, shape index: {1}]   ;;  %s836_s4 = inlined_call_operand.hbm [shape: f32[1,8], index: 4, kind: output, shape index: {2}]  }
   0x1   :  { %v530_v0 = vld [vmem:[%s833_s1] sm:$0xff]   ;;  %v531_v1 = vld [vmem:[%s833_s1 + $0x8] sm:$0xff]   ;;  %v532_v3 = vld [vmem:[%s833_s1 + $0x10] sm:$0xff]  }
   0x2   :  { %499 = vmatprep.subr.bf16.mxu0 %v530_v0  ;;  %521 = vmatprep.subr.bf16.mxu1 %v530_v0  ;;  %v533_v2 = vld [vmem:[%s832_s0] sm:$0xff]   ;;  %v534_v5 = vld [vmem:[%s832_s0 + $0x8] sm:$0xff]   ;;  %v535_v7 = vld [vmem:[%s832_s0 + $0x10] sm:$0xff]  }
   0x3   :  { %500 = vmatpush3.bf16.msra.mxu0 %v530_v0  ;;  %524 = vmatpush3.bf16.msra.mxu1 %v530_v0  ;;  %v537_v4 = vld [vmem:[%s832_s0 + $0x20] sm:$0xff]   ;;  %v538_v6 = vld [vmem:[%s832_s0 + $0x28] sm:$0xff]   ;;  %v539_v8 = vld [vmem:[%s832_s0 + $0x30] sm:$0xff]  }
   0x4   :  { %501 = vmatprep.subr.bf16.mxu0 %v531_v1  ;;  %522 = vmatprep.subr.bf16.mxu1 %v531_v1 }
   0x5   :  { %505 = vmatprep.mubr.msk.bf16.mxu0 %vm97_vm0, %v533_v2  ;;  %513 = vmatprep.mubr.msk.bf16.mxu1 %vm97_vm0, %v537_v4 }
   0x7   :  { %502 = vmatpush3.bf16.msra.mxu0 %v531_v1  ;;  %525 = vmatpush3.bf16.msra.mxu1 %v531_v1 }
   0x8   :  { %503 = vmatprep.subr.bf16.mxu0 %v532_v3  ;;  %523 = vmatprep.subr.bf16.mxu1 %v532_v3 }
   0xb   :  { %504 = vmatpush3.bf16.msra.mxu0 %v532_v3  ;;  %526 = vmatpush3.bf16.msra.mxu1 %v532_v3 }
   0xc   :  { %11 = vsyncpa [#allocation5], 0  ;;  %v536_v9 = vld [vmem:[%s832_s0 + $0x18] sm:$0xff]   ;;  %vm304_vm1 = vcmask 57344   ;;  %v589_v11 = vmov 0.0   ;;  %vm283_vm2 = vcmask 60416  }
   0xd   :  { %v540_v10 = vld [vmem:[%s832_s0 + $0x38] sm:$0xff]   ;;  %305 = vst.msk [vmem:[#allocation2] sm:$0x1] %vm304_vm1, %v589_v11  ;;  %306 = vst.msk [vmem:[#allocation4] sm:$0x1] %vm304_vm1, %v589_v11  ;;  %vm308_vm3 = vcmask 64512  }
   0xe   :  { %506 = vmatmul.mubr.msk.bf16.vlgmr.msra.gmra.mrb[0].mxu0 %vm97_vm0, %v534_v5  ;;  %514 = vmatmul.mubr.msk.bf16.vlgmr.msra.gmra.mrb[0].mxu1 %vm97_vm0, %v538_v6  ;;  %s591_s14 = smov [#allocation4]  }
   0xf   :  { %509 = vmatprep.mubr.msk.bf16.mxu0 %vm97_vm0, %v535_v7  ;;  %517 = vmatprep.mubr.msk.bf16.mxu1 %vm97_vm0, %v539_v8  ;;  %s423_s15 = sshll.u32 %s591_s14, 4  ;;  %s799_s15 = int_to_ptr.vmem [resolvable:$true] %s423_s15 }
  0x16   :  { %510 = vmatmul.mubr.msk.bf16.gmra.mrb[4].mxu0 %vm97_vm0, %v536_v9  ;;  %518 = vmatmul.mubr.msk.bf16.gmra.mrb[4].mxu1 %vm97_vm0, %v540_v10 }
  0xe1   :  { %v507_v12 = vpop.f32.mrb[0].mxu0  ;;  %v660_v13 = vpop.f32.mrb[0].mxu1 }
  0xe2   :  { %v474_v14 = vpack.c.bf16 %v507_v12, %v507_v12  ;;  %v156_v15 = vpop.f32.mrb[1].mxu0  ;;  %v482_v16 = vpack.c.bf16 %v660_v13, %v660_v13  ;;  %v664_v17 = vpop.f32.mrb[1].mxu1  ;;  %v352_v22 = vmul.f32 %v507_v12, %v507_v12  ;;  %v312_v33 = vsel %vm308_vm3, %v507_v12, 0.0 }
  0xe3   :  { %v472_v18 = vpack.c.bf16 %v156_v15, %v156_v15  ;;  %v350_v19 = vmul.f32 %v156_v15, %v156_v15  ;;  %v508_v20 = vpop.f32.mrb[2].mxu0  ;;  %v666_v21 = vpop.f32.mrb[2].mxu1  ;;  %v309_v26 = vsel %vm308_vm3, %v156_v15, 0.0  ;;  %v480_v32 = vpack.c.bf16 %v664_v17, %v664_v17 }
  0xe4   :  { %286 = vst.msk [vmem:[%s834_s2 + $0x8] sm:$0xf] %vm283_vm2, %v474_v14  ;;  %v475_v23 = vpack.c.bf16 %v508_v20, %v508_v20  ;;  %v159_v24 = vpop.f32.mrb[3].mxu0  ;;  %294 = vst.msk [vmem:[%s834_s2 + $0x28] sm:$0xf] %vm283_vm2, %v482_v16  ;;  %v676_v25 = vpop.f32.mrb[3].mxu1  ;;  %v353_v30 = vmul.f32 %v508_v20, %v508_v20  ;;  %v483_v36 = vpack.c.bf16 %v666_v21, %v666_v21 }
  0xe5   :  { %284 = vst.msk [vmem:[%s834_s2] sm:$0xf] %vm283_vm2, %v472_v18  ;;  %v473_v27 = vpack.c.bf16 %v159_v24, %v159_v24  ;;  %v310_v28 = vsel %vm308_vm3, %v159_v24, 0.0  ;;  %v351_v29 = vmul.f32 %v159_v24, %v159_v24  ;;  %v366_v34 = vsel %vm308_vm3, %v350_v19, 0.0  ;;  %292 = vst.msk [vmem:[%s834_s2 + $0x20] sm:$0xf] %vm283_vm2, %v480_v32 }
  0xe6   :  { %287 = vst.msk [vmem:[%s834_s2 + $0xc] sm:$0xf] %vm283_vm2, %v475_v23  ;;  %v311_v31 = vadd.f32 %v310_v28, %v309_v26  ;;  %v369_v39 = vsel %vm308_vm3, %v352_v22, 0.0  ;;  %295 = vst.msk [vmem:[%s834_s2 + $0x2c] sm:$0xf] %vm283_vm2, %v483_v36  ;;  %v481_v41 = vpack.c.bf16 %v676_v25, %v676_v25  ;;  %v314_v43 = vsel %vm308_vm3, %v508_v20, 0.0 }
  0xe7   :  { %285 = vst.msk [vmem:[%s834_s2 + $0x4] sm:$0xf] %vm283_vm2, %v473_v27  ;;  %v367_v35 = vsel %vm308_vm3, %v351_v29, 0.0  ;;  %v371_v44 = vsel %vm308_vm3, %v353_v30, 0.0  ;;  %v358_v3 = vmul.f32 %v664_v17, %v664_v17  ;;  %v324_v14 = vsel %vm308_vm3, %v664_v17, 0.0 }
  0xe8   :  { %v313_v37 = vadd.f32 %v312_v33, %v311_v31  ;;  %v368_v38 = vadd.f32 %v367_v35, %v366_v34  ;;  %293 = vst.msk [vmem:[%s834_s2 + $0x24] sm:$0xf] %vm283_vm2, %v481_v41  ;;  %v359_v23 = vmul.f32 %v676_v25, %v676_v25  ;;  %v360_v26 = vmul.f32 %v660_v13, %v660_v13 }
  0xe9   :  { %v511_v40 = vpop.f32.mrb[4].mxu0  ;;  %v710_v42 = vpop.f32.mrb[4].mxu1  ;;  %v381_v22 = vsel %vm308_vm3, %v358_v3, 0.0  ;;  %v326_v27 = vsel %vm308_vm3, %v676_v25, 0.0  ;;  %v328_v30 = vsel %vm308_vm3, %v660_v13, 0.0  ;;  %v361_v31 = vmul.f32 %v666_v21, %v666_v21 }
  0xea   :  { %v370_v45 = vadd.f32 %v369_v39, %v368_v38  ;;  %v478_v46 = vpack.c.bf16 %v511_v40, %v511_v40  ;;  %v172_v47 = vpop.f32.mrb[5].mxu0  ;;  %v204_v48 = vpop.f32.mrb[5].mxu1  ;;  %v315_v50 = vadd.f32 %v314_v43, %v313_v37  ;;  %v356_v62 = vmul.f32 %v511_v40, %v511_v40 }
  0xeb   :  { %v476_v49 = vpack.c.bf16 %v172_v47, %v172_v47  ;;  %v316_v51 = vsel %vm308_vm3, %v172_v47, 0.0  ;;  %v354_v52 = vmul.f32 %v172_v47, %v172_v47  ;;  %v512_v53 = vpop.f32.mrb[6].mxu0  ;;  %v719_v54 = vpop.f32.mrb[6].mxu1  ;;  %v486_v4 = vpack.c.bf16 %v710_v42, %v710_v42 }
  0xec   :  { %290 = vst.msk [vmem:[%s834_s2 + $0x18] sm:$0xf] %vm283_vm2, %v478_v46  ;;  %v372_v55 = vadd.f32 %v371_v44, %v370_v45  ;;  %v479_v56 = vpack.c.bf16 %v512_v53, %v512_v53  ;;  %v175_v57 = vpop.f32.mrb[7].mxu0  ;;  %v207_v58 = vpop.f32.mrb[7].mxu1  ;;  %v317_v59 = vadd.f32 %v316_v51, %v315_v50  ;;  %v320_v5 = vsel %vm308_vm3, %v511_v40, 0.0 }
  0xed   :  { %288 = vst.msk [vmem:[%s834_s2 + $0x10] sm:$0xf] %vm283_vm2, %v476_v49  ;;  %v373_v60 = vsel %vm308_vm3, %v354_v52, 0.0  ;;  %v477_v61 = vpack.c.bf16 %v175_v57, %v175_v57  ;;  %v318_v0 = vsel %vm308_vm3, %v175_v57, 0.0  ;;  %v355_v1 = vmul.f32 %v175_v57, %v175_v57  ;;  %298 = vst.msk [vmem:[%s834_s2 + $0x38] sm:$0xf] %vm283_vm2, %v486_v4 }
  0xee   :  { %v374_v63 = vadd.f32 %v373_v60, %v372_v55  ;;  %291 = vst.msk [vmem:[%s834_s2 + $0x1c] sm:$0xf] %vm283_vm2, %v479_v56  ;;  %v319_v2 = vadd.f32 %v318_v0, %v317_v59  ;;  %v357_v6 = vmul.f32 %v512_v53, %v512_v53  ;;  %v484_v8 = vpack.c.bf16 %v204_v48, %v204_v48  ;;  %v307_v4 = vld [vmem:[#allocation2] sm:$0x1] }
  0xef   :  { %289 = vst.msk [vmem:[%s834_s2 + $0x14] sm:$0xf] %vm283_vm2, %v477_v61  ;;  %v375_v7 = vsel %vm308_vm3, %v355_v1, 0.0  ;;  %v377_v11 = vsel %vm308_vm3, %v356_v62, 0.0  ;;  %v322_v12 = vsel %vm308_vm3, %v512_v53, 0.0  ;;  %v487_v15 = vpack.c.bf16 %v719_v54, %v719_v54 }
  0xf0   :  { %v321_v9 = vadd.f32 %v320_v5, %v319_v2  ;;  %v376_v10 = vadd.f32 %v375_v7, %v374_v63  ;;  %296 = vst.msk [vmem:[%s834_s2 + $0x30] sm:$0xf] %vm283_vm2, %v484_v8  ;;  %v485_v19 = vpack.c.bf16 %v207_v58, %v207_v58  ;;  %v379_v20 = vsel %vm308_vm3, %v357_v6, 0.0 }
  0xf1   :  { %299 = vst.msk [vmem:[%s834_s2 + $0x3c] sm:$0xf] %vm283_vm2, %v487_v15  ;;  %v383_v32 = vsel %vm308_vm3, %v359_v23, 0.0  ;;  %v362_v33 = vmul.f32 %v204_v48, %v204_v48  ;;  %v385_v36 = vsel %vm308_vm3, %v360_v26, 0.0  ;;  %v330_v37 = vsel %vm308_vm3, %v666_v21, 0.0 }
  0xf2   :  { %v378_v16 = vadd.f32 %v377_v11, %v376_v10  ;;  %v323_v18 = vadd.f32 %v322_v12, %v321_v9  ;;  %297 = vst.msk [vmem:[%s834_s2 + $0x34] sm:$0xf] %vm283_vm2, %v485_v19  ;;  %v332_v25 = vsel %vm308_vm3, %v204_v48, 0.0  ;;  %v387_v40 = vsel %vm308_vm3, %v361_v31, 0.0  ;;  %s590_s2 = smov [#allocation2]  }
  0xf3   :  { %v389_v13 = vsel %vm308_vm3, %v362_v33, 0.0  ;;  %v363_v41 = vmul.f32 %v207_v58, %v207_v58  ;;  %v364_v45 = vmul.f32 %v710_v42, %v710_v42  ;;  %v334_v46 = vsel %vm308_vm3, %v207_v58, 0.0  ;;  %s413_s13 = sshll.u32 %s590_s2, 4  ;;  %s414_s13 = int_to_ptr.vmem [resolvable:$true] %s413_s13 }
  0xf4   :  { %v325_v17 = vadd.f32 %v324_v14, %v323_v18  ;;  %v380_v24 = vadd.f32 %v379_v20, %v378_v16  ;;  %v336_v21 = vsel %vm308_vm3, %v710_v42, 0.0  ;;  %v365_v48 = vmul.f32 %v719_v54, %v719_v54  ;;  %s541_s16 = scalar_lea.vmem %s414_s13, 16  ;;  %s545_s17 = scalar_lea.vmem %s414_s13, 32 }
  0xf5   :  { %v391_v50 = vsel %vm308_vm3, %v363_v41, 0.0  ;;  %v393_v53 = vsel %vm308_vm3, %v364_v45, 0.0  ;;  %v338_v55 = vsel %vm308_vm3, %v719_v54, 0.0  ;;  %v349_v54 = vld [vmem:[#allocation4] sm:$0x1]  ;;  %p542_p0 = scmp.ne.s32.totalorder %s414_s13, %s541_s16  ;;  %p546_p1 = scmp.lt.s32.totalorder %s414_s13, %s414_s13 }
  0xf6   :  { %v382_v28 = vadd.f32 %v381_v22, %v380_v24  ;;  %v327_v29 = vadd.f32 %v326_v27, %v325_v17  ;;  %v395_v58 = vsel %vm308_vm3, %v365_v48, 0.0  ;;  %p547_p2 = scmp.lt.s32.totalorder %s545_s17, %s541_s16 }
  0xf8   :  { %v329_v34 = vadd.f32 %v328_v30, %v327_v29  ;;  %v384_v35 = vadd.f32 %v383_v32, %v382_v28  ;;  %p548_p3 = por %p547_p2, %p546_p1 }
  0xfa   :  { %v386_v38 = vadd.f32 %v385_v36, %v384_v35  ;;  %v331_v39 = vadd.f32 %v330_v37, %v329_v34  ;;  %p549_p4 = pnand %p548_p3, %p542_p0 }
  0xfc   :  { %v333_v43 = vadd.f32 %v332_v25, %v331_v39  ;;  %v388_v44 = vadd.f32 %v387_v40, %v386_v38 }
  0xfe   :  { %v390_v47 = vadd.f32 %v389_v13, %v388_v44  ;;  %v335_v49 = vadd.f32 %v334_v46, %v333_v43 }
 0x100   :  { %v337_v51 = vadd.f32 %v336_v21, %v335_v49  ;;  %v392_v52 = vadd.f32 %v391_v50, %v390_v47 }
 0x102   :  { %v339_v56 = vadd.f32 %v338_v55, %v337_v51  ;;  %v394_v57 = vadd.f32 %v393_v53, %v392_v52 }
 0x104   :  { %v340_v59 = vrot.slane %v339_v56, 4  ;;  %v396_v60 = vadd.f32 %v395_v58, %v394_v57 }
 0x106   :  { %v341_v61 = vadd.f32 %v340_v59, %v339_v56  ;;  %v397_v42 = vrot.slane %v396_v60, 4 }
 0x108   :  { %v342_v62 = vrot.slane %v341_v61, 2  ;;  %v398_v63 = vadd.f32 %v397_v42, %v396_v60 }
 0x10a   :  { %v343_v0 = vadd.f32 %v342_v62, %v341_v61  ;;  %v399_v1 = vrot.slane %v398_v63, 2 }
 0x10c   :  { %v344_v2 = vrot.slane %v343_v0, 1  ;;  %v400_v3 = vadd.f32 %v399_v1, %v398_v63 }
 0x10e   :  { %v345_v5 = vadd.f32 %v344_v2, %v343_v0  ;;  %v401_v6 = vrot.slane %v400_v3, 1 }
 0x110   :  { %v346_v7 = vadd.f32 %v345_v5, %v307_v4  ;;  %v402_v8 = vadd.f32 %v401_v6, %v400_v3 }
 0x112   :  { %348 = vst.msk [vmem:[#allocation2] sm:$0x1] %vm304_vm1, %v346_v7  ;;  %v403_v9 = vadd.f32 %v402_v8, %v349_v54 }
 0x113   :  { %552 = shalt.err (!%p549_p4)
}
 0x114   :  { %s553_s20 = scalar_lea.hbm %s835_s3, 16 }
 0x115   :  { %p554_p5 = scmp.ne.s32.totalorder %s835_s3, %s553_s20  ;;  %p557_p6 = scmp.lt.u32.totalorder %s553_s20, %s835_s3 }
 0x117   :  { %p559_p7 = pnand %p557_p6, %p554_p5 }
 0x119   :  { %562 = shalt.err (!%p559_p7)
}
 0x11a   :  { %416 = dma.vmem_to_hbm [thread:$0]  %s414_s13, 16, %s835_s3, [#allocation3]   ;;  %404 = vst.msk [vmem:[#allocation4] sm:$0x1] %vm304_vm1, %v403_v9 }
 0x11b   :  { %s563_s27 = scalar_lea.vmem %s799_s15, 16  ;;  %s567_s28 = scalar_lea.vmem %s799_s15, 32 }
 0x11c   :  { %p564_p8 = scmp.ne.s32.totalorder %s799_s15, %s563_s27  ;;  %p568_p9 = scmp.lt.s32.totalorder %s799_s15, %s799_s15 }
 0x11d   :  { %p569_p10 = scmp.lt.s32.totalorder %s567_s28, %s563_s27 }
 0x11f   :  { %p570_p11 = por %p569_p10, %p568_p9 }
 0x121   :  { %p571_p12 = pnand %p570_p11, %p564_p8 }
 0x123   :  { %574 = shalt.err (!%p571_p12)
}
 0x124   :  { %s575_s30 = scalar_lea.hbm %s836_s4, 16 }
 0x125   :  { %p576_p13 = scmp.ne.s32.totalorder %s836_s4, %s575_s30  ;;  %p579_p0 = scmp.lt.u32.totalorder %s575_s30, %s836_s4 }
 0x127   :  { %p581_p1 = pnand %p579_p0, %p576_p13 }
 0x129   :  { %584 = shalt.err (!%p581_p1)
}
 0x12a   :  { %426 = dma.vmem_to_hbm [thread:$0]  %s799_s15, 16, %s836_s4, [#allocation5]  }
 0x12b   :  { %585 = dma.done.wait [#allocation3], 16  }
 0x12c   :  { %586 = vsyncadd [#allocation3], 4294967280 }
 0x12d   :  { %587 = dma.done.wait [#allocation5], 16  }
 0x12e   :  { %588 = vsyncadd [#allocation5], 4294967280 }
 0x12f   :  { %435 = vsyncpa [#allocation3], 1 }
 0x130   :  { %436 = vsyncpa [#allocation5], 1 }

</bundles_post_ra>
